<compile_context>
chip_gen: v7x
topology: tpu7x:2x2x1
jax: 0.10.0
libtpu: 0.0.40
codegen_flags: <defaults>
</compile_context>

<pallas_src>
import jax
import jax.numpy as jnp
from jax.experimental import pallas as pl
from jax.experimental.pallas import tpu as pltpu

_LANES = 128
_TARGET_TILE_BYTES = 4 << 20  # ~4 MiB per buffer: step overhead < ~5% on v6e/v7x


# ----------------------------------------------------------------------------
# Zero-DMA identity: output aliases input, empty body -> nothing is moved.
# ----------------------------------------------------------------------------
def _identity_alias_kernel(x_ref, o_ref):
    # Intentionally empty: the output buffer IS the input buffer (aliased),
    # so there is no data movement to perform.
    del x_ref, o_ref


def identity(x: jax.Array) -> jax.Array:
    """Pallas equivalent of Identity.forward: returns x (zero-copy alias)."""
    if x.ndim == 0 or x.size == 0:
        return x
    return pl.pallas_call(
        _identity_alias_kernel,
        out_shape=jax.ShapeDtypeStruct(x.shape, x.dtype),
        in_specs=[pl.BlockSpec(memory_space=pl.ANY)],
        out_specs=pl.BlockSpec(memory_space=pl.ANY),
        input_output_aliases={0: 0},
        cost_estimate=pl.CostEstimate(flops=0, transcendentals=0, bytes_accessed=0),
    )(x)


# ----------------------------------------------------------------------------
# Materializing copy (only if a fresh buffer is required).
# ----------------------------------------------------------------------------
def _identity_copy_kernel(x_ref, o_ref):
    o_ref[...] = x_ref[...]


def _round_up(v: int, m: int) -> int:
    return ((v + m - 1) // m) * m


def identity_copy(x: jax.Array, *, target_tile_bytes: int = _TARGET_TILE_BYTES) -> jax.Array:
    """Identity as an explicit HBM copy (fresh output buffer)."""
    if x.ndim == 0 or x.size == 0:
        return x

    orig_shape = x.shape
    n = x.size
    itemsize = jnp.dtype(x.dtype).itemsize
    # Sublane packing: f32 -> 8, bf16 -> 16, int8/fp8 -> 32.
    sub = max(8, 32 // max(1, itemsize))

    # Lane-dense flat view (rows, 128).  Pad at most 127 elements so the
    # reshape is legal; no padding at all when n is already lane-aligned.
    pad = (-n) % _LANES
    x_flat = x.reshape(-1)
    if pad:
        x_flat = jnp.pad(x_flat, (0, pad))
    rows = (n + pad) // _LANES
    x2d = x_flat.reshape(rows, _LANES)

    # Byte-budgeted tile height (multiple of the sublane packing).
    max_tile_rows = max(sub, (target_tile_bytes // (_LANES * itemsize)) // sub * sub)
    n_blocks = pl.cdiv(rows, max_tile_rows)
    # Keep >= 2 grid steps for large arrays so the "parallel" axis can be
    # split across both TensorCores on v7x (harmless elsewhere).
    if n_blocks == 1 and rows * _LANES * itemsize >= (1 << 20) and rows >= 2 * sub:
        n_blocks = 2
    if n_blocks == 1:
        tile_rows = rows  # single full-array block (no (8,128) constraint applies)
    else:
        tile_rows = _round_up(pl.cdiv(rows, n_blocks), sub)
    grid_n = pl.cdiv(rows, tile_rows)  # ragged final block handled by Pallas OOB masking

    nbytes = n * itemsize
    out2d = pl.pallas_call(
        _identity_copy_kernel,
        out_shape=jax.ShapeDtypeStruct((rows, _LANES), x.dtype),
        grid=(grid_n,),
        in_specs=[pl.BlockSpec((tile_rows, _LANES), lambda i: (i, 0))],
        out_specs=pl.BlockSpec((tile_rows, _LANES), lambda i: (i, 0)),
        compiler_params=pltpu.CompilerParams(
            dimension_semantics=("parallel",),
            vmem_limit_bytes=32 << 20,  # 2 streams x 2 buffers x 4 MiB = 16 MiB + headroom
        ),
        cost_estimate=pl.CostEstimate(
            flops=0, transcendentals=0, bytes_accessed=2 * nbytes
        ),
    )(x2d)

    out_flat = out2d.reshape(-1)
    if pad:
        out_flat = out_flat[:n]
    return out_flat.reshape(orig_shape)


if __name__ == "__main__":
    key = jax.random.PRNGKey(0)
    x = jax.random.normal(key, (2, 4, 16, 16), dtype=jnp.float32)

    # Primary (zero-DMA aliased) path.
    out = jax.block_until_ready(identity(x))
    assert out.shape == x.shape, out.shape
    assert out.dtype == x.dtype, out.dtype
    assert jnp.array_equal(out, x), "mismatch vs reference (Identity, alias path)"

    # Materializing copy path on the same input.
    out_c = jax.block_until_ready(identity_copy(x))
    assert out_c.shape == x.shape and out_c.dtype == x.dtype
    assert jnp.array_equal(out_c, x), "mismatch vs reference (Identity, copy path)"

    # Flat size not a multiple of 128 + sub-32-bit dtype (ragged lane tail).
    x2 = jax.random.normal(jax.random.PRNGKey(1), (3, 5, 7), dtype=jnp.bfloat16)
    out2 = jax.block_until_ready(identity_copy(x2))
    assert out2.shape == x2.shape and out2.dtype == x2.dtype
    assert jnp.array_equal(out2, x2), "mismatch vs reference (ragged copy path)"
    out2a = jax.block_until_ready(identity(x2))
    assert jnp.array_equal(out2a, x2), "mismatch vs reference (ragged alias path)"

    # Multi-block grid with a ragged FINAL block (tiny tile budget forces
    # grid=3 over 17 rows), exercising Pallas's OOB write masking.
    x3 = jax.random.normal(jax.random.PRNGKey(2), (2, 4, 16, 17), dtype=jnp.float32)
    out3 = jax.block_until_ready(identity_copy(x3, target_tile_bytes=4096))
    assert out3.shape == x3.shape and out3.dtype == x3.dtype
    assert jnp.array_equal(out3, x3), "mismatch vs reference (multi-block ragged path)"

    print("KERNEL_OK")
</pallas_src>

<mosaic_0001>
module attributes {stable_mosaic.version = 11 : i64} {
  func.func @_identity_alias_kernel(%arg0: memref<2x4x16x16xf32, #tpu.memory_space<any>>, %arg1: memref<2x4x16x16xf32, #tpu.memory_space<any>>) attributes {dimension_semantics = [], scalar_prefetch = 0 : i64, scratch_operands = 0 : i64, tpu.core_type = #tpu.core_type<tc>} {
    return
  }
}

</mosaic_0001>

<bundles_post_ra>
// kernel: tpu_custom_call.1
= control target key start
LH: loop header
LB: loop body
LE: loop exit
PB: predicated region body
PF: predicated region fallthrough
CT: control target
= control target key end

     0   :  { %s16_s0 = inlined_call_operand.hbm [shape: f32[2,4,16,16], index: 0, kind: input, shape index: {}, may-alias: {0,1}]   ;;  %s17_s1 = inlined_call_operand.hbm [shape: f32[2,4,16,16], index: 1, kind: output, shape index: {}, may-alias: {0,1}]  }

</bundles_post_ra>
